<compile_context>
chip_gen: v5e
topology: v5e:2x2
jax: 0.10.0
libtpu: 0.0.40
codegen_flags: <defaults>
</compile_context>

<pallas_src>
import functools

import jax
import jax.numpy as jnp
from jax.experimental import pallas as pl
from jax.experimental.pallas import tpu as pltpu


# ---------------------------------------------------------------------------
# Host-side (glue) construction of interpolation matrices.
# ---------------------------------------------------------------------------
def _interp_matrix(out_size: int, in_size: int) -> jnp.ndarray:
    """Row-interpolation matrix for 1-D bilinear resize, align_corners=True."""
    if out_size == 1:
        pos = jnp.zeros((1,), dtype=jnp.float32)
    else:
        pos = jnp.arange(out_size, dtype=jnp.float32) * (
            (in_size - 1) / (out_size - 1)
        )
    i0 = jnp.clip(jnp.floor(pos).astype(jnp.int32), 0, in_size - 1)
    i1 = jnp.minimum(i0 + 1, in_size - 1)
    frac = pos - i0.astype(jnp.float32)
    w = jnp.zeros((out_size, in_size), dtype=jnp.float32)
    rows = jnp.arange(out_size)
    w = w.at[rows, i0].add(1.0 - frac)
    w = w.at[rows, i1].add(frac)
    return w


# ---------------------------------------------------------------------------
# Kernels.
# ---------------------------------------------------------------------------
def _kron_interp_kernel(x_ref, k_ref, o_ref):
    # x_ref: (B_CHUNK, H_in*W_in)     lane-dense input slab
    # k_ref: (H_in*W_in, H_out*W_out) kron(Wh, Ww)^T, resident across the grid
    # o_ref: (B_CHUNK, H_out*W_out)   lane-dense output slab
    o_ref[...] = jnp.dot(
        x_ref[...], k_ref[...], preferred_element_type=jnp.float32
    ).astype(o_ref.dtype)


def _separable_interp_kernel(x_ref, wh_ref, wwt_ref, o_ref):
    # Fallback for large planes (dense kron too big for VMEM).
    # x_ref:   (1, H_in,  W_in)
    # wh_ref:  (H_out, H_in)
    # wwt_ref: (W_in, W_out)   (pre-transposed on host)
    # o_ref:   (1, H_out, W_out)
    t = jnp.dot(wh_ref[...], x_ref[0], preferred_element_type=jnp.float32)
    o_ref[0] = jnp.dot(
        t, wwt_ref[...], preferred_element_type=jnp.float32
    ).astype(o_ref.dtype)


# ---------------------------------------------------------------------------
# Block-size selection.
# ---------------------------------------------------------------------------
_VMEM_BLOCK_BUDGET = 24 * 1024 * 1024  # conservative; fits v7x's smaller VMEM
_VMEM_LIMIT_BYTES = 48 * 1024 * 1024


def _choose_b_chunk(B, hw_in, hw_out, x_itemsize, w_itemsize, budget_bytes):
    """Pick how many (N*C) planes to process per grid step for the kron path.

    Returns None when the dense kron matrix does not fit the VMEM budget
    (caller falls back to the separable per-plane kernel).
    """
    weight_bytes = 2 * hw_in * hw_out * w_itemsize        # conservatively x2
    per_plane = 2 * (hw_in + hw_out) * x_itemsize          # double-buffered io
    avail = budget_bytes - weight_bytes
    if avail <= per_plane:
        return None
    max_bc = max(1, avail // per_plane)
    # Block second-minor dim must be a multiple of 8 (sublane tile) or equal
    # the full batch dim; it must also divide B so every grid step is full.
    cands = [
        d
        for d in range(1, B + 1)
        if B % d == 0 and (d % 8 == 0 or d == B) and d <= max_bc
    ]
    if not cands:
        return None

    def score(d):
        g = B // d
        # Prefer an even grid of length >= 2 (v7x: 2 TensorCores), then the
        # largest chunk (amortizes per-step overhead, bigger DMAs).
        return (g % 2 == 0 and g >= 2, d)

    return max(cands, key=score)


# ---------------------------------------------------------------------------
# Public wrapper (matches InterpolationBlock.forward semantics).
# ---------------------------------------------------------------------------
@functools.partial(
    jax.jit,
    static_argnames=(
        "scale_factor",
        "out_size",
        "up",
        "mode",
        "align_corners",
        "force_impl",
    ),
)
def interpolation_block(
    x,
    *,
    scale_factor=2,
    out_size=None,
    up=True,
    mode="bilinear",
    align_corners=True,
    force_impl=None,
):
    """Bilinear resize with align_corners=True on NCHW input."""
    if mode != "bilinear" or not align_corners:
        # TODO(synk): non-bilinear modes / align_corners=False not implemented.
        raise NotImplementedError("Only mode='bilinear', align_corners=True.")

    N, C, H, W = x.shape
    if out_size is not None:
        if isinstance(out_size, int):
            out_size = (out_size, out_size)
        H_out, W_out = out_size
    elif up:
        H_out, W_out = H * scale_factor, W * scale_factor
    else:
        H_out, W_out = H // scale_factor, W // scale_factor

    # bf16 weights only when activations are bf16 (pure-bf16 MXU path);
    # keep f32 weights for f32 inputs to preserve 1e-5 accuracy.
    w_dtype = jnp.bfloat16 if x.dtype == jnp.bfloat16 else jnp.float32

    wh = _interp_matrix(H_out, H)   # (H_out, H_in)
    ww = _interp_matrix(W_out, W)   # (W_out, W_in)

    B = N * C
    hw_in, hw_out = H * W, H_out * W_out
    x_itemsize = jnp.dtype(x.dtype).itemsize
    w_itemsize = jnp.dtype(w_dtype).itemsize

    if force_impl == "separable":
        bc = None
    else:
        bc = _choose_b_chunk(
            B, hw_in, hw_out, x_itemsize, w_itemsize, _VMEM_BLOCK_BUDGET
        )

    compiler_params = pltpu.CompilerParams(
        dimension_semantics=("parallel",),
        vmem_limit_bytes=_VMEM_LIMIT_BYTES,
    )

    if bc is not None:
        # --- kron path: one lane-dense matmul per batch chunk --------------
        # K^T[(hi, wi), (ho, wo)] = Wh[ho, hi] * Ww[wo, wi]
        k = (
            jnp.einsum("oh,pw->hwop", wh, ww)
            .reshape(hw_in, hw_out)
            .astype(w_dtype)
        )
        x_flat = x.reshape(B, hw_in)          # free reshape (contiguous NCHW)

        out_flat = pl.pallas_call(
            _kron_interp_kernel,
            out_shape=jax.ShapeDtypeStruct((B, hw_out), x.dtype),
            grid_spec=pltpu.PrefetchScalarGridSpec(
                num_scalar_prefetch=0,
                grid=(B // bc,),
                in_specs=[
                    pl.BlockSpec((bc, hw_in), lambda b: (b, 0)),
                    pl.BlockSpec((hw_in, hw_out), lambda b: (0, 0)),
                ],
                out_specs=pl.BlockSpec((bc, hw_out), lambda b: (b, 0)),
            ),
            compiler_params=compiler_params,
        )(x_flat, k)
        return out_flat.reshape(N, C, H_out, W_out)

    # --- separable fallback (large planes): two matmuls per plane ----------
    wh_c = wh.astype(w_dtype)                 # (H_out, H_in)
    ww_t = ww.T.astype(w_dtype)               # (W_in, W_out), pre-transposed
    x_flat = x.reshape(B, H, W)

    out_flat = pl.pallas_call(
        _separable_interp_kernel,
        out_shape=jax.ShapeDtypeStruct((B, H_out, W_out), x.dtype),
        grid_spec=pltpu.PrefetchScalarGridSpec(
            num_scalar_prefetch=0,
            grid=(B,),
            in_specs=[
                pl.BlockSpec((1, H, W), lambda b: (b, 0, 0)),
                pl.BlockSpec((H_out, H), lambda b: (0, 0)),
                pl.BlockSpec((W, W_out), lambda b: (0, 0)),
            ],
            out_specs=pl.BlockSpec((1, H_out, W_out), lambda b: (b, 0, 0)),
        ),
        compiler_params=compiler_params,
    )(x_flat, wh_c, ww_t)
    return out_flat.reshape(N, C, H_out, W_out)


# ---------------------------------------------------------------------------
# Pure-JAX reference (matches torch bilinear, align_corners=True).
# ---------------------------------------------------------------------------
def _reference_bilinear_align_corners(x, H_out, W_out):
    N, C, H, W = x.shape
    ys = jnp.linspace(0.0, H - 1.0, H_out)
    xs = jnp.linspace(0.0, W - 1.0, W_out)
    y0 = jnp.clip(jnp.floor(ys).astype(jnp.int32), 0, H - 1)
    y1 = jnp.minimum(y0 + 1, H - 1)
    x0 = jnp.clip(jnp.floor(xs).astype(jnp.int32), 0, W - 1)
    x1 = jnp.minimum(x0 + 1, W - 1)
    wy = (ys - y0.astype(jnp.float32))[None, None, :, None]
    wx = (xs - x0.astype(jnp.float32))[None, None, None, :]

    top = x[:, :, y0, :][:, :, :, x0] * (1 - wx) + x[:, :, y0, :][:, :, :, x1] * wx
    bot = x[:, :, y1, :][:, :, :, x0] * (1 - wx) + x[:, :, y1, :][:, :, :, x1] * wx
    return top * (1 - wy) + bot * wy


if __name__ == "__main__":
    key = jax.random.PRNGKey(0)
    k1, k2 = jax.random.split(key)

    # Primary case: 2x bilinear upsample (kron path; B=16 -> chunk 8, grid 2).
    N, C, H, W = 2, 8, 16, 16
    x = jax.random.normal(k1, (N, C, H, W), dtype=jnp.float32)

    out = jax.block_until_ready(interpolation_block(x, scale_factor=2, up=True))
    assert out.shape == (N, C, 2 * H, 2 * W), out.shape
    assert out.dtype == x.dtype
    ref = _reference_bilinear_align_corners(x, 2 * H, 2 * W)
    assert jnp.allclose(out, ref, atol=1e-5, rtol=1e-5), float(
        jnp.max(jnp.abs(out - ref))
    )

    # Downsample path (up=False) through the same kernel.
    out_dn = jax.block_until_ready(
        interpolation_block(x, scale_factor=2, up=False)
    )
    assert out_dn.shape == (N, C, H // 2, W // 2), out_dn.shape
    ref_dn = _reference_bilinear_align_corners(x, H // 2, W // 2)
    assert jnp.allclose(out_dn, ref_dn, atol=1e-5, rtol=1e-5), float(
        jnp.max(jnp.abs(out_dn - ref_dn))
    )

    # Explicit out_size through the separable (large-plane) fallback kernel.
    x2 = jax.random.normal(k2, (1, 2, 16, 24), dtype=jnp.float32)
    out_sz = jax.block_until_ready(
        interpolation_block(x2, out_size=(24, 40), force_impl="separable")
    )
    assert out_sz.shape == (1, 2, 24, 40), out_sz.shape
    ref_sz = _reference_bilinear_align_corners(x2, 24, 40)
    assert jnp.allclose(out_sz, ref_sz, atol=1e-5, rtol=1e-5), float(
        jnp.max(jnp.abs(out_sz - ref_sz))
    )

    print("KERNEL_OK")
</pallas_src>

<mosaic_0001>
module attributes {stable_mosaic.version = 11 : i64} {
  func.func @_kron_interp_kernel(%arg0: i32, %arg1: memref<8x256xf32, #tpu.memory_space<vmem>>, %arg2: memref<256x1024xf32, #tpu.memory_space<vmem>>, %arg3: memref<8x1024xf32, #tpu.memory_space<vmem>>) attributes {dimension_semantics = [#tpu.dimension_semantics<parallel>], iteration_bounds = array<i64: 2>, scalar_prefetch = 0 : i64, scratch_operands = 0 : i64, tpu.core_type = #tpu.core_type<tc>, window_params = [{transform_indices = @transform_0, window_bounds = array<i64: 8, 256>}, {pipeline_mode = #tpu.pipeline_mode<synchronous>, transform_indices = @transform_1, window_bounds = array<i64: 256, 1024>}, {transform_indices = @transform_2, window_bounds = array<i64: 8, 1024>}]} {
    %c0 = arith.constant 0 : index
    %c0_0 = arith.constant 0 : index
    %0 = vector.load %arg1[%c0, %c0_0] : memref<8x256xf32, #tpu.memory_space<vmem>>, vector<8x256xf32>
    %c0_1 = arith.constant 0 : index
    %c0_2 = arith.constant 0 : index
    %1 = vector.load %arg2[%c0_1, %c0_2] : memref<256x1024xf32, #tpu.memory_space<vmem>>, vector<256x1024xf32>
    %cst = arith.constant dense<0.000000e+00> : vector<8x1024xf32>
    %2 = tpu.matmul %0, %1, %cst {dimension_numbers = #tpu.dot_dimension_numbers<[1], [0], [0], [1], [0, 0, 1, 1], [], []>} : vector<8x256xf32>, vector<256x1024xf32>, vector<8x1024xf32> -> vector<8x1024xf32>
    %c0_3 = arith.constant 0 : index
    %c0_4 = arith.constant 0 : index
    %3 = vector.load %arg3[%c0_3, %c0_4] : memref<8x1024xf32, #tpu.memory_space<vmem>>, vector<8x1024xf32>
    tpu.vector_store %arg3[%c0_3, %c0_4], %2 {strides = array<i32>} : memref<8x1024xf32, #tpu.memory_space<vmem>>, vector<8x1024xf32>,
    return
  }
  func.func @transform_0(%arg0: i32) -> (i32, i32) {
    %c0_i32 = arith.constant 0 : i32
    %c0_i32_0 = arith.constant 0 : i32
    return %arg0, %c0_i32 : i32, i32
  }
  func.func @transform_1(%arg0: i32) -> (i32, i32) {
    %c0_i32 = arith.constant 0 : i32
    %c0_i32_0 = arith.constant 0 : i32
    %c0_i32_1 = arith.constant 0 : i32
    return %c0_i32, %c0_i32_0 : i32, i32
  }
  func.func @transform_2(%arg0: i32) -> (i32, i32) {
    %c0_i32 = arith.constant 0 : i32
    %c0_i32_0 = arith.constant 0 : i32
    return %arg0, %c0_i32 : i32, i32
  }
}

</mosaic_0001>

<bundles_post_ra>
// kernel: interpolation_block.1
= control target key start
LH: loop header
LB: loop body
LE: loop exit
PB: predicated region body
PF: predicated region fallthrough
CT: control target
= control target key end

     0   :  { %s829_s9 = smov 0   ;;  %s1658_s0 = inlined_call_operand.vmem [shape: f32[16,256], index: 0, kind: input, shape index: {}]   ;;  %s1659_s1 = inlined_call_operand.vmem [shape: f32[256,1024], index: 1, kind: input, shape index: {}]   ;;  %s1660_s2 = inlined_call_operand.vmem [shape: f32[16,1024], index: 2, kind: output, shape index: {}]  }
   0x1 LB: > { %s785_s10 = sadd.s32 4294967295, %s812_s9   ;;  %p789_p0 = scmp.ge.s32.totalorder %s812_s9, 1  ;;  %s812_s9 = sphi %s829_s9, %s12_s9  }
   0x2   : > { %p112_p1 = scmp.lt.s32.totalorder %s812_s9, 3 }
   0x4   : > { %p113_p2 = pnand %p789_p0, %p112_p1 }
   0x5   : > { %p1127_p3 = scmp.lt.s32.totalorder (!%p113_p2), %s785_s10, 1 }
   0x6   : > { %116 = sbr.rel (%p113_p2) target bundleno = 279 (0x117), region = 28 }
   0xb   : > { %v267_v0 = vld [vmem:[%s1659_s1 + $0x3c8] sm:$0xff]  ;;  %v266_v6 = vld [vmem:[%s1659_s1 + $0x3c0] sm:$0xff]  ;;  %v269_v60 = vld [vmem:[%s1659_s1 + $0x3d8] sm:$0xff]  ;;  %s1663_s10 = smov (!%p1127_p3, %s785_s10), 1 }
   0xc   : > { %v395_v1 = vld [vmem:[%s1659_s1 + $0x7c8] sm:$0xff]  ;;  %442 = vmatpush.msra.mxu2 %v267_v0  ;;  %v394_v7 = vld [vmem:[%s1659_s1 + $0x7c0] sm:$0xff]  ;;  %402 = vmatpush.msra.mxu0 %v266_v6  ;;  %v397_v61 = vld [vmem:[%s1659_s1 + $0x7d8] sm:$0xff]  ;;  %s796_s28 = sshll.u32 %s1663_s10, 4  ;;  %s797_s6 = sshll.u32 %s1663_s10, 6 }
   0xd   : > { %v259_v2 = vld [vmem:[%s1659_s1 + $0x388] sm:$0xff]  ;;  %462 = vmatpush.msra.mxu3 %v395_v1  ;;  %v258_v8 = vld [vmem:[%s1659_s1 + $0x380] sm:$0xff]  ;;  %422 = vmatpush.msra.mxu1 %v394_v7  ;;  %v261_v0 = vld [vmem:[%s1659_s1 + $0x398] sm:$0xff]  ;;  %s138_s17 = scalar_lea.vmem %s1658_s0, %s796_s28  ;;  %s1645_s11 = scalar_lea.vmem %s1660_s2, %s797_s6 }
   0xe   : > { %v387_v3 = vld [vmem:[%s1659_s1 + $0x788] sm:$0xff]  ;;  %443 = vmatpush.msra.mxu2 %v259_v2  ;;  %v386_v9 = vld [vmem:[%s1659_s1 + $0x780] sm:$0xff]  ;;  %403 = vmatpush.msra.mxu0 %v258_v8  ;;  %v389_v1 = vld [vmem:[%s1659_s1 + $0x798] sm:$0xff] }
   0xf   : > { %v251_v4 = vld [vmem:[%s1659_s1 + $0x348] sm:$0xff]  ;;  %463 = vmatpush.msra.mxu3 %v387_v3  ;;  %v250_v12 = vld [vmem:[%s1659_s1 + $0x340] sm:$0xff]  ;;  %423 = vmatpush.msra.mxu1 %v386_v9  ;;  %v268_v6 = vld [vmem:[%s1659_s1 + $0x3d0] sm:$0xff] }
  0x10   : > { %v379_v5 = vld [vmem:[%s1659_s1 + $0x748] sm:$0xff]  ;;  %444 = vmatpush.msra.mxu2 %v251_v4  ;;  %v378_v13 = vld [vmem:[%s1659_s1 + $0x740] sm:$0xff]  ;;  %404 = vmatpush.msra.mxu0 %v250_v12  ;;  %v253_v4 = vld [vmem:[%s1659_s1 + $0x358] sm:$0xff] }
  0x11   : > { %v243_v10 = vld [vmem:[%s1659_s1 + $0x308] sm:$0xff]  ;;  %464 = vmatpush.msra.mxu3 %v379_v5  ;;  %v242_v16 = vld [vmem:[%s1659_s1 + $0x300] sm:$0xff]  ;;  %424 = vmatpush.msra.mxu1 %v378_v13  ;;  %v381_v5 = vld [vmem:[%s1659_s1 + $0x758] sm:$0xff] }
  0x12   : > { %v371_v11 = vld [vmem:[%s1659_s1 + $0x708] sm:$0xff]  ;;  %445 = vmatpush.msra.mxu2 %v243_v10  ;;  %v370_v17 = vld [vmem:[%s1659_s1 + $0x700] sm:$0xff]  ;;  %405 = vmatpush.msra.mxu0 %v242_v16  ;;  %v396_v7 = vld [vmem:[%s1659_s1 + $0x7d0] sm:$0xff] }
  0x13   : > { %v235_v14 = vld [vmem:[%s1659_s1 + $0x2c8] sm:$0xff]  ;;  %465 = vmatpush.msra.mxu3 %v371_v11  ;;  %v234_v20 = vld [vmem:[%s1659_s1 + $0x2c0] sm:$0xff]  ;;  %425 = vmatpush.msra.mxu1 %v370_v17  ;;  %v245_v8 = vld [vmem:[%s1659_s1 + $0x318] sm:$0xff] }
  0x14   : > { %v363_v15 = vld [vmem:[%s1659_s1 + $0x6c8] sm:$0xff]  ;;  %446 = vmatpush.msra.mxu2 %v235_v14  ;;  %v362_v21 = vld [vmem:[%s1659_s1 + $0x6c0] sm:$0xff]  ;;  %406 = vmatpush.msra.mxu0 %v234_v20  ;;  %v373_v9 = vld [vmem:[%s1659_s1 + $0x718] sm:$0xff] }
  0x15   : > { %v227_v18 = vld [vmem:[%s1659_s1 + $0x288] sm:$0xff]  ;;  %466 = vmatpush.msra.mxu3 %v363_v15  ;;  %v226_v24 = vld [vmem:[%s1659_s1 + $0x280] sm:$0xff]  ;;  %426 = vmatpush.msra.mxu1 %v362_v21  ;;  %v260_v10 = vld [vmem:[%s1659_s1 + $0x390] sm:$0xff] }
  0x16   : > { %v355_v19 = vld [vmem:[%s1659_s1 + $0x688] sm:$0xff]  ;;  %447 = vmatpush.msra.mxu2 %v227_v18  ;;  %v354_v25 = vld [vmem:[%s1659_s1 + $0x680] sm:$0xff]  ;;  %407 = vmatpush.msra.mxu0 %v226_v24  ;;  %v388_v11 = vld [vmem:[%s1659_s1 + $0x790] sm:$0xff] }
  0x17   : > { %v219_v22 = vld [vmem:[%s1659_s1 + $0x248] sm:$0xff]  ;;  %467 = vmatpush.msra.mxu3 %v355_v19  ;;  %v218_v28 = vld [vmem:[%s1659_s1 + $0x240] sm:$0xff]  ;;  %427 = vmatpush.msra.mxu1 %v354_v25  ;;  %v237_v12 = vld [vmem:[%s1659_s1 + $0x2d8] sm:$0xff] }
  0x18   : > { %v347_v23 = vld [vmem:[%s1659_s1 + $0x648] sm:$0xff]  ;;  %448 = vmatpush.msra.mxu2 %v219_v22  ;;  %v346_v29 = vld [vmem:[%s1659_s1 + $0x640] sm:$0xff]  ;;  %408 = vmatpush.msra.mxu0 %v218_v28  ;;  %v365_v13 = vld [vmem:[%s1659_s1 + $0x6d8] sm:$0xff] }
  0x19   : > { %v211_v26 = vld [vmem:[%s1659_s1 + $0x208] sm:$0xff]  ;;  %468 = vmatpush.msra.mxu3 %v347_v23  ;;  %v210_v32 = vld [vmem:[%s1659_s1 + $0x200] sm:$0xff]  ;;  %428 = vmatpush.msra.mxu1 %v346_v29  ;;  %v252_v14 = vld [vmem:[%s1659_s1 + $0x350] sm:$0xff] }
  0x1a   : > { %v339_v27 = vld [vmem:[%s1659_s1 + $0x608] sm:$0xff]  ;;  %449 = vmatpush.msra.mxu2 %v211_v26  ;;  %v338_v33 = vld [vmem:[%s1659_s1 + $0x600] sm:$0xff]  ;;  %409 = vmatpush.msra.mxu0 %v210_v32  ;;  %v380_v15 = vld [vmem:[%s1659_s1 + $0x750] sm:$0xff] }
  0x1b   : > { %v203_v30 = vld [vmem:[%s1659_s1 + $0x1c8] sm:$0xff]  ;;  %469 = vmatpush.msra.mxu3 %v339_v27  ;;  %v202_v36 = vld [vmem:[%s1659_s1 + $0x1c0] sm:$0xff]  ;;  %429 = vmatpush.msra.mxu1 %v338_v33  ;;  %v229_v16 = vld [vmem:[%s1659_s1 + $0x298] sm:$0xff] }
  0x1c   : > { %v331_v31 = vld [vmem:[%s1659_s1 + $0x5c8] sm:$0xff]  ;;  %450 = vmatpush.msra.mxu2 %v203_v30  ;;  %v330_v37 = vld [vmem:[%s1659_s1 + $0x5c0] sm:$0xff]  ;;  %410 = vmatpush.msra.mxu0 %v202_v36  ;;  %v357_v17 = vld [vmem:[%s1659_s1 + $0x698] sm:$0xff] }
  0x1d   : > { %v195_v34 = vld [vmem:[%s1659_s1 + $0x188] sm:$0xff]  ;;  %470 = vmatpush.msra.mxu3 %v331_v31  ;;  %v194_v40 = vld [vmem:[%s1659_s1 + $0x180] sm:$0xff]  ;;  %430 = vmatpush.msra.mxu1 %v330_v37  ;;  %v244_v18 = vld [vmem:[%s1659_s1 + $0x310] sm:$0xff] }
  0x1e   : > { %v323_v35 = vld [vmem:[%s1659_s1 + $0x588] sm:$0xff]  ;;  %451 = vmatpush.msra.mxu2 %v195_v34  ;;  %v322_v41 = vld [vmem:[%s1659_s1 + $0x580] sm:$0xff]  ;;  %411 = vmatpush.msra.mxu0 %v194_v40  ;;  %v372_v19 = vld [vmem:[%s1659_s1 + $0x710] sm:$0xff] }
  0x1f   : > { %v187_v38 = vld [vmem:[%s1659_s1 + $0x148] sm:$0xff]  ;;  %471 = vmatpush.msra.mxu3 %v323_v35  ;;  %v186_v44 = vld [vmem:[%s1659_s1 + $0x140] sm:$0xff]  ;;  %431 = vmatpush.msra.mxu1 %v322_v41  ;;  %v221_v20 = vld [vmem:[%s1659_s1 + $0x258] sm:$0xff] }
  0x20   : > { %v315_v39 = vld [vmem:[%s1659_s1 + $0x548] sm:$0xff]  ;;  %452 = vmatpush.msra.mxu2 %v187_v38  ;;  %v314_v45 = vld [vmem:[%s1659_s1 + $0x540] sm:$0xff]  ;;  %412 = vmatpush.msra.mxu0 %v186_v44  ;;  %v349_v21 = vld [vmem:[%s1659_s1 + $0x658] sm:$0xff] }
  0x21   : > { %v179_v42 = vld [vmem:[%s1659_s1 + $0x108] sm:$0xff]  ;;  %472 = vmatpush.msra.mxu3 %v315_v39  ;;  %v178_v48 = vld [vmem:[%s1659_s1 + $0x100] sm:$0xff]  ;;  %432 = vmatpush.msra.mxu1 %v314_v45  ;;  %v236_v22 = vld [vmem:[%s1659_s1 + $0x2d0] sm:$0xff] }
  0x22   : > { %v307_v43 = vld [vmem:[%s1659_s1 + $0x508] sm:$0xff]  ;;  %453 = vmatpush.msra.mxu2 %v179_v42  ;;  %v306_v49 = vld [vmem:[%s1659_s1 + $0x500] sm:$0xff]  ;;  %413 = vmatpush.msra.mxu0 %v178_v48  ;;  %v364_v23 = vld [vmem:[%s1659_s1 + $0x6d0] sm:$0xff] }
  0x23   : > { %v171_v46 = vld [vmem:[%s1659_s1 + $0xc8] sm:$0xff]  ;;  %473 = vmatpush.msra.mxu3 %v307_v43  ;;  %v170_v52 = vld [vmem:[%s1659_s1 + $0xc0] sm:$0xff]  ;;  %433 = vmatpush.msra.mxu1 %v306_v49  ;;  %v213_v24 = vld [vmem:[%s1659_s1 + $0x218] sm:$0xff] }
  0x24   : > { %v299_v47 = vld [vmem:[%s1659_s1 + $0x4c8] sm:$0xff]  ;;  %454 = vmatpush.msra.mxu2 %v171_v46  ;;  %v298_v53 = vld [vmem:[%s1659_s1 + $0x4c0] sm:$0xff]  ;;  %414 = vmatpush.msra.mxu0 %v170_v52  ;;  %v341_v25 = vld [vmem:[%s1659_s1 + $0x618] sm:$0xff] }
  0x25   : > { %v163_v50 = vld [vmem:[%s1659_s1 + $0x88] sm:$0xff]  ;;  %474 = vmatpush.msra.mxu3 %v299_v47  ;;  %v162_v56 = vld [vmem:[%s1659_s1 + $0x80] sm:$0xff]  ;;  %434 = vmatpush.msra.mxu1 %v298_v53  ;;  %v228_v26 = vld [vmem:[%s1659_s1 + $0x290] sm:$0xff] }
  0x26   : > { %v291_v51 = vld [vmem:[%s1659_s1 + $0x488] sm:$0xff]  ;;  %455 = vmatpush.msra.mxu2 %v163_v50  ;;  %v290_v57 = vld [vmem:[%s1659_s1 + $0x480] sm:$0xff]  ;;  %415 = vmatpush.msra.mxu0 %v162_v56  ;;  %v356_v27 = vld [vmem:[%s1659_s1 + $0x690] sm:$0xff] }
  0x27   : > { %v155_v54 = vld [vmem:[%s1659_s1 + $0x48] sm:$0xff]  ;;  %475 = vmatpush.msra.mxu3 %v291_v51  ;;  %435 = vmatpush.msra.mxu1 %v290_v57  ;;  %v154_v62 = vld [vmem:[%s1659_s1 + $0x40] sm:$0xff]  ;;  %v205_v28 = vld [vmem:[%s1659_s1 + $0x1d8] sm:$0xff] }
  0x28   : > { %v283_v55 = vld [vmem:[%s1659_s1 + $0x448] sm:$0xff]  ;;  %456 = vmatpush.msra.mxu2 %v155_v54  ;;  %v282_v63 = vld [vmem:[%s1659_s1 + $0x440] sm:$0xff]  ;;  %416 = vmatpush.msra.mxu0 %v154_v62  ;;  %v333_v29 = vld [vmem:[%s1659_s1 + $0x5d8] sm:$0xff] }
  0x29   : > { %v147_v58 = vld [vmem:[%s1659_s1 + $0x8] sm:$0xff]  ;;  %476 = vmatpush.msra.mxu3 %v283_v55  ;;  %v146_v2 = vld [vmem:[%s1659_s1] sm:$0xff]  ;;  %436 = vmatpush.msra.mxu1 %v282_v63  ;;  %v220_v30 = vld [vmem:[%s1659_s1 + $0x250] sm:$0xff] }
  0x2a   : > { %v275_v59 = vld [vmem:[%s1659_s1 + $0x408] sm:$0xff]  ;;  %457 = vmatpush.msra.mxu2 %v147_v58  ;;  %v274_v3 = vld [vmem:[%s1659_s1 + $0x400] sm:$0xff]  ;;  %417 = vmatpush.msra.mxu0 %v146_v2  ;;  %v348_v31 = vld [vmem:[%s1659_s1 + $0x650] sm:$0xff] }
  0x2b   : > { %477 = vmatpush.msra.mxu3 %v275_v59  ;;  %437 = vmatpush.msra.mxu1 %v274_v3  ;;  %v197_v32 = vld [vmem:[%s1659_s1 + $0x198] sm:$0xff]  ;;  %v212_v34 = vld [vmem:[%s1659_s1 + $0x210] sm:$0xff]  ;;  %v1219_v58 = vld [vmem:[%s138_s17] sm:$0xff] }
  0x2c   : > { %522 = vmatpush.msrb.mxu2 %v269_v60  ;;  %482 = vmatpush.msrb.mxu0 %v268_v6  ;;  %v325_v33 = vld [vmem:[%s1659_s1 + $0x598] sm:$0xff]  ;;  %v340_v35 = vld [vmem:[%s1659_s1 + $0x610] sm:$0xff]  ;;  %v1221_v59 = vld [vmem:[%s138_s17 + $0x8] sm:$0xff] }
  0x2d   : > { %542 = vmatpush.msrb.mxu3 %v397_v61  ;;  %502 = vmatpush.msrb.mxu1 %v396_v7  ;;  %v189_v36 = vld [vmem:[%s1659_s1 + $0x158] sm:$0xff]  ;;  %v204_v38 = vld [vmem:[%s1659_s1 + $0x1d0] sm:$0xff]  ;;  %v271_v60 = vld [vmem:[%s1659_s1 + $0x3e8] sm:$0xff] }
  0x2e   : > { %523 = vmatpush.msrb.mxu2 %v261_v0  ;;  %483 = vmatpush.msrb.mxu0 %v260_v10  ;;  %v317_v37 = vld [vmem:[%s1659_s1 + $0x558] sm:$0xff]  ;;  %v332_v39 = vld [vmem:[%s1659_s1 + $0x5d0] sm:$0xff]  ;;  %v399_v61 = vld [vmem:[%s1659_s1 + $0x7e8] sm:$0xff] }
  0x2f   : > { %543 = vmatpush.msrb.mxu3 %v389_v1  ;;  %503 = vmatpush.msrb.mxu1 %v388_v11  ;;  %v181_v40 = vld [vmem:[%s1659_s1 + $0x118] sm:$0xff]  ;;  %v196_v42 = vld [vmem:[%s1659_s1 + $0x190] sm:$0xff]  ;;  %v263_v0 = vld [vmem:[%s1659_s1 + $0x3a8] sm:$0xff] }
  0x30   : > { %524 = vmatpush.msrb.mxu2 %v253_v4  ;;  %484 = vmatpush.msrb.mxu0 %v252_v14  ;;  %v309_v41 = vld [vmem:[%s1659_s1 + $0x518] sm:$0xff]  ;;  %v324_v43 = vld [vmem:[%s1659_s1 + $0x590] sm:$0xff]  ;;  %v391_v1 = vld [vmem:[%s1659_s1 + $0x7a8] sm:$0xff] }
  0x31   : > { %544 = vmatpush.msrb.mxu3 %v381_v5  ;;  %504 = vmatpush.msrb.mxu1 %v380_v15  ;;  %v173_v44 = vld [vmem:[%s1659_s1 + $0xd8] sm:$0xff]  ;;  %v188_v46 = vld [vmem:[%s1659_s1 + $0x150] sm:$0xff]  ;;  %v255_v4 = vld [vmem:[%s1659_s1 + $0x368] sm:$0xff] }
  0x32   : > { %525 = vmatpush.msrb.mxu2 %v245_v8  ;;  %485 = vmatpush.msrb.mxu0 %v244_v18  ;;  %v301_v45 = vld [vmem:[%s1659_s1 + $0x4d8] sm:$0xff]  ;;  %v316_v47 = vld [vmem:[%s1659_s1 + $0x550] sm:$0xff]  ;;  %v383_v5 = vld [vmem:[%s1659_s1 + $0x768] sm:$0xff] }
  0x33   : > { %545 = vmatpush.msrb.mxu3 %v373_v9  ;;  %505 = vmatpush.msrb.mxu1 %v372_v19  ;;  %v165_v48 = vld [vmem:[%s1659_s1 + $0x98] sm:$0xff]  ;;  %v180_v50 = vld [vmem:[%s1659_s1 + $0x110] sm:$0xff]  ;;  %v270_v8 = vld [vmem:[%s1659_s1 + $0x3e0] sm:$0xff] }
  0x34   : > { %526 = vmatpush.msrb.mxu2 %v237_v12  ;;  %486 = vmatpush.msrb.mxu0 %v236_v22  ;;  %v293_v49 = vld [vmem:[%s1659_s1 + $0x498] sm:$0xff]  ;;  %v308_v51 = vld [vmem:[%s1659_s1 + $0x510] sm:$0xff]  ;;  %v398_v9 = vld [vmem:[%s1659_s1 + $0x7e0] sm:$0xff] }
  0x35   : > { %546 = vmatpush.msrb.mxu3 %v365_v13  ;;  %506 = vmatpush.msrb.mxu1 %v364_v23  ;;  %v157_v52 = vld [vmem:[%s1659_s1 + $0x58] sm:$0xff]  ;;  %v172_v54 = vld [vmem:[%s1659_s1 + $0xd0] sm:$0xff]  ;;  %v247_v10 = vld [vmem:[%s1659_s1 + $0x328] sm:$0xff] }
  0x36   : > { %527 = vmatpush.msrb.mxu2 %v229_v16  ;;  %487 = vmatpush.msrb.mxu0 %v228_v26  ;;  %v285_v53 = vld [vmem:[%s1659_s1 + $0x458] sm:$0xff]  ;;  %v300_v55 = vld [vmem:[%s1659_s1 + $0x4d0] sm:$0xff]  ;;  %v375_v11 = vld [vmem:[%s1659_s1 + $0x728] sm:$0xff] }
  0x37   : > { %547 = vmatpush.msrb.mxu3 %v357_v17  ;;  %507 = vmatpush.msrb.mxu1 %v356_v27  ;;  %v149_v56 = vld [vmem:[%s1659_s1 + $0x18] sm:$0xff]  ;;  %v164_v62 = vld [vmem:[%s1659_s1 + $0x90] sm:$0xff]  ;;  %v262_v12 = vld [vmem:[%s1659_s1 + $0x3a0] sm:$0xff] }
  0x38   : > { %528 = vmatpush.msrb.mxu2 %v221_v20  ;;  %488 = vmatpush.msrb.mxu0 %v220_v30  ;;  %v277_v57 = vld [vmem:[%s1659_s1 + $0x418] sm:$0xff]  ;;  %v292_v63 = vld [vmem:[%s1659_s1 + $0x490] sm:$0xff]  ;;  %v390_v13 = vld [vmem:[%s1659_s1 + $0x7a0] sm:$0xff] }
  0x39   : > { %548 = vmatpush.msrb.mxu3 %v349_v21  ;;  %508 = vmatpush.msrb.mxu1 %v348_v31  ;;  %v156_v2 = vld [vmem:[%s1659_s1 + $0x50] sm:$0xff]  ;;  %v239_v14 = vld [vmem:[%s1659_s1 + $0x2e8] sm:$0xff]  ;;  %v254_v16 = vld [vmem:[%s1659_s1 + $0x360] sm:$0xff] }
  0x3a   : > { %529 = vmatpush.msrb.mxu2 %v213_v24  ;;  %489 = vmatpush.msrb.mxu0 %v212_v34  ;;  %v284_v3 = vld [vmem:[%s1659_s1 + $0x450] sm:$0xff]  ;;  %v367_v15 = vld [vmem:[%s1659_s1 + $0x6e8] sm:$0xff]  ;;  %v382_v17 = vld [vmem:[%s1659_s1 + $0x760] sm:$0xff] }
  0x3b   : > { %549 = vmatpush.msrb.mxu3 %v341_v25  ;;  %509 = vmatpush.msrb.mxu1 %v340_v35  ;;  %v148_v6 = vld [vmem:[%s1659_s1 + $0x10] sm:$0xff]  ;;  %v231_v18 = vld [vmem:[%s1659_s1 + $0x2a8] sm:$0xff]  ;;  %v246_v20 = vld [vmem:[%s1659_s1 + $0x320] sm:$0xff] }
  0x3c   : > { %530 = vmatpush.msrb.mxu2 %v205_v28  ;;  %490 = vmatpush.msrb.mxu0 %v204_v38  ;;  %v276_v7 = vld [vmem:[%s1659_s1 + $0x410] sm:$0xff]  ;;  %v359_v19 = vld [vmem:[%s1659_s1 + $0x6a8] sm:$0xff]  ;;  %v374_v21 = vld [vmem:[%s1659_s1 + $0x720] sm:$0xff] }
  0x3d   : > { %550 = vmatpush.msrb.mxu3 %v333_v29  ;;  %510 = vmatpush.msrb.mxu1 %v332_v39  ;;  %v223_v22 = vld [vmem:[%s1659_s1 + $0x268] sm:$0xff]  ;;  %v238_v24 = vld [vmem:[%s1659_s1 + $0x2e0] sm:$0xff] }
  0x3e   : > { %531 = vmatpush.msrb.mxu2 %v197_v32  ;;  %491 = vmatpush.msrb.mxu0 %v196_v42  ;;  %v351_v23 = vld [vmem:[%s1659_s1 + $0x668] sm:$0xff]  ;;  %v366_v25 = vld [vmem:[%s1659_s1 + $0x6e0] sm:$0xff] }
  0x3f   : > { %551 = vmatpush.msrb.mxu3 %v325_v33  ;;  %511 = vmatpush.msrb.mxu1 %v324_v43  ;;  %v215_v26 = vld [vmem:[%s1659_s1 + $0x228] sm:$0xff]  ;;  %v230_v28 = vld [vmem:[%s1659_s1 + $0x2a0] sm:$0xff] }
  0x40   : > { %532 = vmatpush.msrb.mxu2 %v189_v36  ;;  %492 = vmatpush.msrb.mxu0 %v188_v46  ;;  %v343_v27 = vld [vmem:[%s1659_s1 + $0x628] sm:$0xff]  ;;  %v358_v29 = vld [vmem:[%s1659_s1 + $0x6a0] sm:$0xff] }
  0x41   : > { %552 = vmatpush.msrb.mxu3 %v317_v37  ;;  %512 = vmatpush.msrb.mxu1 %v316_v47  ;;  %v207_v30 = vld [vmem:[%s1659_s1 + $0x1e8] sm:$0xff]  ;;  %v222_v32 = vld [vmem:[%s1659_s1 + $0x260] sm:$0xff] }
  0x42   : > { %533 = vmatpush.msrb.mxu2 %v181_v40  ;;  %493 = vmatpush.msrb.mxu0 %v180_v50  ;;  %v335_v31 = vld [vmem:[%s1659_s1 + $0x5e8] sm:$0xff]  ;;  %v350_v33 = vld [vmem:[%s1659_s1 + $0x660] sm:$0xff] }
  0x43   : > { %553 = vmatpush.msrb.mxu3 %v309_v41  ;;  %513 = vmatpush.msrb.mxu1 %v308_v51  ;;  %v199_v34 = vld [vmem:[%s1659_s1 + $0x1a8] sm:$0xff]  ;;  %v214_v36 = vld [vmem:[%s1659_s1 + $0x220] sm:$0xff] }
  0x44   : > { %534 = vmatpush.msrb.mxu2 %v173_v44  ;;  %494 = vmatpush.msrb.mxu0 %v172_v54  ;;  %v327_v35 = vld [vmem:[%s1659_s1 + $0x5a8] sm:$0xff]  ;;  %v342_v37 = vld [vmem:[%s1659_s1 + $0x620] sm:$0xff] }
  0x45   : > { %554 = vmatpush.msrb.mxu3 %v301_v45  ;;  %514 = vmatpush.msrb.mxu1 %v300_v55  ;;  %v191_v38 = vld [vmem:[%s1659_s1 + $0x168] sm:$0xff]  ;;  %v206_v40 = vld [vmem:[%s1659_s1 + $0x1e0] sm:$0xff] }
  0x46   : > { %535 = vmatpush.msrb.mxu2 %v165_v48  ;;  %478 = vmatmul.f32.vlgmr.msra.gmra.mxu3 %v1221_v59  ;;  %v319_v39 = vld [vmem:[%s1659_s1 + $0x568] sm:$0xff]  ;;  %v334_v41 = vld [vmem:[%s1659_s1 + $0x5e0] sm:$0xff] }
  0x47   : > { %555 = vmatpush.msrb.mxu3 %v293_v49  ;;  %458 = vmatmul.f32.vlgmr.msra.gmra.mxu2 %v1219_v58  ;;  %v183_v42 = vld [vmem:[%s1659_s1 + $0x128] sm:$0xff]  ;;  %v198_v44 = vld [vmem:[%s1659_s1 + $0x1a0] sm:$0xff] }
  0x48   : > { %536 = vmatpush.msrb.mxu2 %v157_v52  ;;  %495 = vmatpush.msrb.mxu0 %v164_v62  ;;  %v311_v43 = vld [vmem:[%s1659_s1 + $0x528] sm:$0xff]  ;;  %v326_v45 = vld [vmem:[%s1659_s1 + $0x5a0] sm:$0xff]  ;;  %v273_v62 = vld [vmem:[%s1659_s1 + $0x3f8] sm:$0xff] }
  0x49   : > { %556 = vmatpush.msrb.mxu3 %v285_v53  ;;  %515 = vmatpush.msrb.mxu1 %v292_v63  ;;  %v175_v46 = vld [vmem:[%s1659_s1 + $0xe8] sm:$0xff]  ;;  %v190_v48 = vld [vmem:[%s1659_s1 + $0x160] sm:$0xff]  ;;  %v401_v63 = vld [vmem:[%s1659_s1 + $0x7f8] sm:$0xff] }
  0x4a   : > { %537 = vmatpush.msrb.mxu2 %v149_v56  ;;  %496 = vmatpush.msrb.mxu0 %v156_v2  ;;  %v303_v47 = vld [vmem:[%s1659_s1 + $0x4e8] sm:$0xff]  ;;  %v318_v49 = vld [vmem:[%s1659_s1 + $0x560] sm:$0xff]  ;;  %v265_v2 = vld [vmem:[%s1659_s1 + $0x3b8] sm:$0xff] }
  0x4b   : > { %557 = vmatpush.msrb.mxu3 %v277_v57  ;;  %516 = vmatpush.msrb.mxu1 %v284_v3  ;;  %v167_v50 = vld [vmem:[%s1659_s1 + $0xa8] sm:$0xff]  ;;  %v182_v52 = vld [vmem:[%s1659_s1 + $0x120] sm:$0xff]  ;;  %v393_v3 = vld [vmem:[%s1659_s1 + $0x7b8] sm:$0xff] }
  0x4c   : > { %602 = vmatpush.msra.mxu2 %v271_v60  ;;  %497 = vmatpush.msrb.mxu0 %v148_v6  ;;  %v295_v51 = vld [vmem:[%s1659_s1 + $0x4a8] sm:$0xff]  ;;  %v310_v53 = vld [vmem:[%s1659_s1 + $0x520] sm:$0xff]  ;;  %v257_v6 = vld [vmem:[%s1659_s1 + $0x378] sm:$0xff] }
  0x4d   : > { %622 = vmatpush.msra.mxu3 %v399_v61  ;;  %517 = vmatpush.msrb.mxu1 %v276_v7  ;;  %v159_v54 = vld [vmem:[%s1659_s1 + $0x68] sm:$0xff]  ;;  %v174_v56 = vld [vmem:[%s1659_s1 + $0xe0] sm:$0xff]  ;;  %v385_v7 = vld [vmem:[%s1659_s1 + $0x778] sm:$0xff] }
  0x4e   : > { %603 = vmatpush.msra.mxu2 %v263_v0  ;;  %418 = vmatmul.f32.vlgmr.msra.gmra.mxu0 %v1219_v58  ;;  %v287_v55 = vld [vmem:[%s1659_s1 + $0x468] sm:$0xff]  ;;  %v302_v57 = vld [vmem:[%s1659_s1 + $0x4e0] sm:$0xff] }
  0x4f   : > { %623 = vmatpush.msra.mxu3 %v391_v1  ;;  %438 = vmatmul.f32.vlgmr.msra.gmra.mxu1 %v1221_v59  ;;  %v151_v60 = vld [vmem:[%s1659_s1 + $0x28] sm:$0xff]  ;;  %v166_v0 = vld [vmem:[%s1659_s1 + $0xa0] sm:$0xff] }
  0x50   : > { %604 = vmatpush.msra.mxu2 %v255_v4  ;;  %562 = vmatpush.msra.mxu0 %v270_v8  ;;  %v279_v61 = vld [vmem:[%s1659_s1 + $0x428] sm:$0xff]  ;;  %v294_v1 = vld [vmem:[%s1659_s1 + $0x4a0] sm:$0xff] }
  0x51   : > { %624 = vmatpush.msra.mxu3 %v383_v5  ;;  %582 = vmatpush.msra.mxu1 %v398_v9  ;;  %v158_v4 = vld [vmem:[%s1659_s1 + $0x60] sm:$0xff] }
  0x52   : > { %605 = vmatpush.msra.mxu2 %v247_v10  ;;  %563 = vmatpush.msra.mxu0 %v262_v12  ;;  %v286_v5 = vld [vmem:[%s1659_s1 + $0x460] sm:$0xff]  ;;  %v272_v10 = vld [vmem:[%s1659_s1 + $0x3f0] sm:$0xff]  ;;  %v249_v12 = vld [vmem:[%s1659_s1 + $0x338] sm:$0xff] }
  0x53   : > { %625 = vmatpush.msra.mxu3 %v375_v11  ;;  %583 = vmatpush.msra.mxu1 %v390_v13  ;;  %v150_v8 = vld [vmem:[%s1659_s1 + $0x20] sm:$0xff]  ;;  %v400_v11 = vld [vmem:[%s1659_s1 + $0x7f0] sm:$0xff]  ;;  %v377_v13 = vld [vmem:[%s1659_s1 + $0x738] sm:$0xff] }
  0x54   : > { %606 = vmatpush.msra.mxu2 %v239_v14  ;;  %564 = vmatpush.msra.mxu0 %v254_v16  ;;  %v278_v9 = vld [vmem:[%s1659_s1 + $0x420] sm:$0xff]  ;;  %v264_v14 = vld [vmem:[%s1659_s1 + $0x3b0] sm:$0xff]  ;;  %v241_v16 = vld [vmem:[%s1659_s1 + $0x2f8] sm:$0xff] }
  0x55   : > { %626 = vmatpush.msra.mxu3 %v367_v15  ;;  %584 = vmatpush.msra.mxu1 %v382_v17  ;;  %v392_v15 = vld [vmem:[%s1659_s1 + $0x7b0] sm:$0xff]  ;;  %v369_v17 = vld [vmem:[%s1659_s1 + $0x6f8] sm:$0xff] }
  0x56   : > { %607 = vmatpush.msra.mxu2 %v231_v18  ;;  %565 = vmatpush.msra.mxu0 %v246_v20  ;;  %v256_v18 = vld [vmem:[%s1659_s1 + $0x370] sm:$0xff]  ;;  %v233_v20 = vld [vmem:[%s1659_s1 + $0x2b8] sm:$0xff] }
  0x57   : > { %627 = vmatpush.msra.mxu3 %v359_v19  ;;  %585 = vmatpush.msra.mxu1 %v374_v21  ;;  %v384_v19 = vld [vmem:[%s1659_s1 + $0x770] sm:$0xff]  ;;  %v361_v21 = vld [vmem:[%s1659_s1 + $0x6b8] sm:$0xff] }
  0x58   : > { %608 = vmatpush.msra.mxu2 %v223_v22  ;;  %566 = vmatpush.msra.mxu0 %v238_v24  ;;  %v248_v22 = vld [vmem:[%s1659_s1 + $0x330] sm:$0xff]  ;;  %v225_v24 = vld [vmem:[%s1659_s1 + $0x278] sm:$0xff] }
  0x59   : > { %628 = vmatpush.msra.mxu3 %v351_v23  ;;  %586 = vmatpush.msra.mxu1 %v366_v25  ;;  %v376_v23 = vld [vmem:[%s1659_s1 + $0x730] sm:$0xff]  ;;  %v353_v25 = vld [vmem:[%s1659_s1 + $0x678] sm:$0xff] }
  0x5a   : > { %609 = vmatpush.msra.mxu2 %v215_v26  ;;  %567 = vmatpush.msra.mxu0 %v230_v28  ;;  %v240_v26 = vld [vmem:[%s1659_s1 + $0x2f0] sm:$0xff]  ;;  %v217_v28 = vld [vmem:[%s1659_s1 + $0x238] sm:$0xff] }
  0x5b   : > { %629 = vmatpush.msra.mxu3 %v343_v27  ;;  %587 = vmatpush.msra.mxu1 %v358_v29  ;;  %v368_v27 = vld [vmem:[%s1659_s1 + $0x6f0] sm:$0xff]  ;;  %v345_v29 = vld [vmem:[%s1659_s1 + $0x638] sm:$0xff] }
  0x5c   : > { %610 = vmatpush.msra.mxu2 %v207_v30  ;;  %568 = vmatpush.msra.mxu0 %v222_v32  ;;  %v232_v30 = vld [vmem:[%s1659_s1 + $0x2b0] sm:$0xff]  ;;  %v209_v32 = vld [vmem:[%s1659_s1 + $0x1f8] sm:$0xff] }
  0x5d   : > { %630 = vmatpush.msra.mxu3 %v335_v31  ;;  %588 = vmatpush.msra.mxu1 %v350_v33  ;;  %v360_v31 = vld [vmem:[%s1659_s1 + $0x6b0] sm:$0xff]  ;;  %v337_v33 = vld [vmem:[%s1659_s1 + $0x5f8] sm:$0xff] }
  0x5e   : > { %611 = vmatpush.msra.mxu2 %v199_v34  ;;  %569 = vmatpush.msra.mxu0 %v214_v36  ;;  %v224_v34 = vld [vmem:[%s1659_s1 + $0x270] sm:$0xff]  ;;  %v201_v36 = vld [vmem:[%s1659_s1 + $0x1b8] sm:$0xff] }
  0x5f   : > { %631 = vmatpush.msra.mxu3 %v327_v35  ;;  %589 = vmatpush.msra.mxu1 %v342_v37  ;;  %v352_v35 = vld [vmem:[%s1659_s1 + $0x670] sm:$0xff]  ;;  %v329_v37 = vld [vmem:[%s1659_s1 + $0x5b8] sm:$0xff] }
  0x60   : > { %612 = vmatpush.msra.mxu2 %v191_v38  ;;  %570 = vmatpush.msra.mxu0 %v206_v40  ;;  %v216_v38 = vld [vmem:[%s1659_s1 + $0x230] sm:$0xff]  ;;  %v193_v40 = vld [vmem:[%s1659_s1 + $0x178] sm:$0xff] }
  0x61   : > { %632 = vmatpush.msra.mxu3 %v319_v39  ;;  %590 = vmatpush.msra.mxu1 %v334_v41  ;;  %v344_v39 = vld [vmem:[%s1659_s1 + $0x630] sm:$0xff]  ;;  %v321_v41 = vld [vmem:[%s1659_s1 + $0x578] sm:$0xff] }
  0x62   : > { %613 = vmatpush.msra.mxu2 %v183_v42  ;;  %571 = vmatpush.msra.mxu0 %v198_v44  ;;  %v208_v42 = vld [vmem:[%s1659_s1 + $0x1f0] sm:$0xff]  ;;  %v185_v44 = vld [vmem:[%s1659_s1 + $0x138] sm:$0xff] }
  0x63   : > { %633 = vmatpush.msra.mxu3 %v311_v43  ;;  %591 = vmatpush.msra.mxu1 %v326_v45  ;;  %v336_v43 = vld [vmem:[%s1659_s1 + $0x5f0] sm:$0xff]  ;;  %v313_v45 = vld [vmem:[%s1659_s1 + $0x538] sm:$0xff] }
  0x64   : > { %614 = vmatpush.msra.mxu2 %v175_v46  ;;  %572 = vmatpush.msra.mxu0 %v190_v48  ;;  %v200_v46 = vld [vmem:[%s1659_s1 + $0x1b0] sm:$0xff]  ;;  %v177_v48 = vld [vmem:[%s1659_s1 + $0xf8] sm:$0xff] }
  0x65   : > { %634 = vmatpush.msra.mxu3 %v303_v47  ;;  %592 = vmatpush.msra.mxu1 %v318_v49  ;;  %v328_v47 = vld [vmem:[%s1659_s1 + $0x5b0] sm:$0xff]  ;;  %v305_v49 = vld [vmem:[%s1659_s1 + $0x4f8] sm:$0xff] }
  0x66   : > { %615 = vmatpush.msra.mxu2 %v167_v50  ;;  %573 = vmatpush.msra.mxu0 %v182_v52  ;;  %v192_v50 = vld [vmem:[%s1659_s1 + $0x170] sm:$0xff]  ;;  %v169_v52 = vld [vmem:[%s1659_s1 + $0xb8] sm:$0xff] }
  0x67   : > { %635 = vmatpush.msra.mxu3 %v295_v51  ;;  %593 = vmatpush.msra.mxu1 %v310_v53  ;;  %v320_v51 = vld [vmem:[%s1659_s1 + $0x570] sm:$0xff]  ;;  %v297_v53 = vld [vmem:[%s1659_s1 + $0x4b8] sm:$0xff] }
  0x68   : > { %616 = vmatpush.msra.mxu2 %v159_v54  ;;  %574 = vmatpush.msra.mxu0 %v174_v56  ;;  %v184_v54 = vld [vmem:[%s1659_s1 + $0x130] sm:$0xff]  ;;  %v161_v56 = vld [vmem:[%s1659_s1 + $0x78] sm:$0xff] }
  0x69   : > { %636 = vmatpush.msra.mxu3 %v287_v55  ;;  %594 = vmatpush.msra.mxu1 %v302_v57  ;;  %v312_v55 = vld [vmem:[%s1659_s1 + $0x530] sm:$0xff]  ;;  %v289_v57 = vld [vmem:[%s1659_s1 + $0x478] sm:$0xff] }
  0x6a   : > { %617 = vmatpush.msra.mxu2 %v151_v60  ;;  %558 = vmatmul.f32.vlgmr.msrb.gmra.mxu3 %v1221_v59  ;;  %v176_v60 = vld [vmem:[%s1659_s1 + $0xf0] sm:$0xff] }
  0x6b   : > { %637 = vmatpush.msra.mxu3 %v279_v61  ;;  %538 = vmatmul.f32.vlgmr.msrb.gmra.mxu2 %v1219_v58  ;;  %v304_v61 = vld [vmem:[%s1659_s1 + $0x4f0] sm:$0xff] }
  0x6c   : > { %682 = vmatpush.msrb.mxu2 %v273_v62  ;;  %575 = vmatpush.msra.mxu0 %v166_v0  ;;  %v153_v62 = vld [vmem:[%s1659_s1 + $0x38] sm:$0xff]  ;;  %v168_v0 = vld [vmem:[%s1659_s1 + $0xb0] sm:$0xff] }
  0x6d   : > { %702 = vmatpush.msrb.mxu3 %v401_v63  ;;  %595 = vmatpush.msra.mxu1 %v294_v1  ;;  %v281_v63 = vld [vmem:[%s1659_s1 + $0x438] sm:$0xff]  ;;  %v296_v1 = vld [vmem:[%s1659_s1 + $0x4b0] sm:$0xff] }
  0x6e   : > { %683 = vmatpush.msrb.mxu2 %v265_v2  ;;  %576 = vmatpush.msra.mxu0 %v158_v4  ;;  %v160_v2 = vld [vmem:[%s1659_s1 + $0x70] sm:$0xff] }
  0x6f   : > { %703 = vmatpush.msrb.mxu3 %v393_v3  ;;  %596 = vmatpush.msra.mxu1 %v286_v5  ;;  %v288_v3 = vld [vmem:[%s1659_s1 + $0x470] sm:$0xff] }
  0x70   : > { %684 = vmatpush.msrb.mxu2 %v257_v6  ;;  %577 = vmatpush.msra.mxu0 %v150_v8  ;;  %v152_v4 = vld [vmem:[%s1659_s1 + $0x30] sm:$0xff] }
  0x71   : > { %704 = vmatpush.msrb.mxu3 %v385_v7  ;;  %597 = vmatpush.msra.mxu1 %v278_v9  ;;  %v280_v5 = vld [vmem:[%s1659_s1 + $0x430] sm:$0xff] }
  0x72   : > { %498 = vmatmul.f32.vlgmr.msrb.gmra.mxu0 %v1219_v58  ;;  %518 = vmatmul.f32.vlgmr.msrb.gmra.mxu1 %v1221_v59 }
  0x73   : > { %642 = vmatpush.msrb.mxu0 %v272_v10  ;;  %662 = vmatpush.msrb.mxu1 %v400_v11 }
  0x74   : > { %685 = vmatpush.msrb.mxu2 %v249_v12  ;;  %705 = vmatpush.msrb.mxu3 %v377_v13 }
  0x75   : > { %643 = vmatpush.msrb.mxu0 %v264_v14  ;;  %663 = vmatpush.msrb.mxu1 %v392_v15 }
  0x76   : > { %686 = vmatpush.msrb.mxu2 %v241_v16  ;;  %706 = vmatpush.msrb.mxu3 %v369_v17 }
  0x77   : > { %644 = vmatpush.msrb.mxu0 %v256_v18  ;;  %664 = vmatpush.msrb.mxu1 %v384_v19 }
  0x78   : > { %687 = vmatpush.msrb.mxu2 %v233_v20  ;;  %707 = vmatpush.msrb.mxu3 %v361_v21 }
  0x79   : > { %645 = vmatpush.msrb.mxu0 %v248_v22  ;;  %665 = vmatpush.msrb.mxu1 %v376_v23 }
  0x7a   : > { %688 = vmatpush.msrb.mxu2 %v225_v24  ;;  %708 = vmatpush.msrb.mxu3 %v353_v25 }
  0x7b   : > { %646 = vmatpush.msrb.mxu0 %v240_v26  ;;  %666 = vmatpush.msrb.mxu1 %v368_v27 }
  0x7c   : > { %689 = vmatpush.msrb.mxu2 %v217_v28  ;;  %709 = vmatpush.msrb.mxu3 %v345_v29 }
  0x7d   : > { %647 = vmatpush.msrb.mxu0 %v232_v30  ;;  %667 = vmatpush.msrb.mxu1 %v360_v31 }
  0x7e   : > { %690 = vmatpush.msrb.mxu2 %v209_v32  ;;  %710 = vmatpush.msrb.mxu3 %v337_v33 }
  0x7f   : > { %648 = vmatpush.msrb.mxu0 %v224_v34  ;;  %668 = vmatpush.msrb.mxu1 %v352_v35 }
  0x80   : > { %691 = vmatpush.msrb.mxu2 %v201_v36  ;;  %711 = vmatpush.msrb.mxu3 %v329_v37 }
  0x81   : > { %649 = vmatpush.msrb.mxu0 %v216_v38  ;;  %669 = vmatpush.msrb.mxu1 %v344_v39 }
  0x82   : > { %692 = vmatpush.msrb.mxu2 %v193_v40  ;;  %712 = vmatpush.msrb.mxu3 %v321_v41 }
  0x83   : > { %650 = vmatpush.msrb.mxu0 %v208_v42  ;;  %670 = vmatpush.msrb.mxu1 %v336_v43 }
  0x84   : > { %693 = vmatpush.msrb.mxu2 %v185_v44  ;;  %713 = vmatpush.msrb.mxu3 %v313_v45 }
  0x85   : > { %618 = vmatmul.f32.vlgmr.msra.gmra.mxu2 %v1219_v58  ;;  %638 = vmatmul.f32.vlgmr.msra.gmra.mxu3 %v1221_v59 }
  0x86   : > { %651 = vmatpush.msrb.mxu0 %v200_v46  ;;  %671 = vmatpush.msrb.mxu1 %v328_v47 }
  0x87   : > { %694 = vmatpush.msrb.mxu2 %v177_v48  ;;  %714 = vmatpush.msrb.mxu3 %v305_v49 }
  0x88   : > { %652 = vmatpush.msrb.mxu0 %v192_v50  ;;  %672 = vmatpush.msrb.mxu1 %v320_v51 }
  0x89   : > { %695 = vmatpush.msrb.mxu2 %v169_v52  ;;  %715 = vmatpush.msrb.mxu3 %v297_v53 }
  0x8a   : > { %653 = vmatpush.msrb.mxu0 %v184_v54  ;;  %673 = vmatpush.msrb.mxu1 %v312_v55 }
  0x8b   : > { %696 = vmatpush.msrb.mxu2 %v161_v56  ;;  %716 = vmatpush.msrb.mxu3 %v289_v57 }
  0x8c   : > { %578 = vmatmul.f32.vlgmr.msra.gmra.mxu0 %v1219_v58  ;;  %598 = vmatmul.f32.vlgmr.msra.gmra.mxu1 %v1221_v59 }
  0x8d   : > { %654 = vmatpush.msrb.mxu0 %v176_v60  ;;  %674 = vmatpush.msrb.mxu1 %v304_v61 }
  0x8e   : > { %697 = vmatpush.msrb.mxu2 %v153_v62  ;;  %717 = vmatpush.msrb.mxu3 %v281_v63 }
  0x8f   : > { %698 = vmatmul.f32.vlgmr.msrb.gmra.mxu2 %v1219_v58  ;;  %718 = vmatmul.f32.vlgmr.msrb.gmra.mxu3 %v1221_v59 }
  0x90   : > { %655 = vmatpush.msrb.mxu0 %v168_v0  ;;  %675 = vmatpush.msrb.mxu1 %v296_v1 }
  0x92   : > { %656 = vmatpush.msrb.mxu0 %v160_v2  ;;  %676 = vmatpush.msrb.mxu1 %v288_v3 }
  0x94   : > { %657 = vmatpush.msrb.mxu0 %v152_v4  ;;  %677 = vmatpush.msrb.mxu1 %v280_v5 }
  0x95   : > { %658 = vmatmul.f32.vlgmr.msrb.gmra.mxu0 %v1219_v58  ;;  %678 = vmatmul.f32.vlgmr.msrb.gmra.mxu1 %v1221_v59 }
  0xc9   : > { %v479_v7 = vpop.f32.mrf.mxu3 }
  0xca   : > { %v459_v6 = vpop.f32.mrf.mxu2 }
  0xcb   : > { %v419_v8 = vpop.f32.mrf.mxu0  ;;  %v480_v10 = vadd.f32 %v479_v7, %v459_v6 }
  0xcc   : > { %v439_v9 = vpop.f32.mrf.mxu1 }
  0xcd   : > { %v440_v11 = vadd.f32 %v439_v9, %v419_v8  ;;  %723 = vst [vmem:[%s1645_s11 + $0x8] sm:$0xff] %v480_v10 }
  0xcf   : > { %722 = vst [vmem:[%s1645_s11] sm:$0xff] %v440_v11 }
  0xed   : > { %v559_v59 = vpop.f32.mrf.mxu3 }
  0xee   : > { %v539_v58 = vpop.f32.mrf.mxu2 }
  0xef   : > { %v499_v12 = vpop.f32.mrf.mxu0  ;;  %v519_v13 = vpop.f32.mrf.mxu1  ;;  %v560_v14 = vadd.f32 %v559_v59, %v539_v58 }
  0xf0   : > { %v520_v15 = vadd.f32 %v519_v13, %v499_v12 }
  0xf1   : > { %725 = vst [vmem:[%s1645_s11 + $0x18] sm:$0xff] %v560_v14 }
  0xf2   : > { %724 = vst [vmem:[%s1645_s11 + $0x10] sm:$0xff] %v520_v15 }
 0x108   : > { %v619_v16 = vpop.f32.mrf.mxu2  ;;  %v639_v17 = vpop.f32.mrf.mxu3 }
 0x109   : > { %v579_v18 = vpop.f32.mrf.mxu0  ;;  %v599_v19 = vpop.f32.mrf.mxu1  ;;  %v640_v20 = vadd.f32 %v639_v17, %v619_v16 }
 0x10a   : > { %v600_v21 = vadd.f32 %v599_v19, %v579_v18 }
 0x10b   : > { %727 = vst [vmem:[%s1645_s11 + $0x28] sm:$0xff] %v640_v20 }
 0x10c   : > { %726 = vst [vmem:[%s1645_s11 + $0x20] sm:$0xff] %v600_v21 }
 0x112   : > { %v659_v22 = vpop.f32.mrf.mxu0  ;;  %v679_v23 = vpop.f32.mrf.mxu1 }
 0x113   : > { %v680_v24 = vadd.f32 %v679_v23, %v659_v22  ;;  %v699_v25 = vpop.f32.mrf.mxu2  ;;  %v719_v26 = vpop.f32.mrf.mxu3 }
 0x114   : > { %v720_v27 = vadd.f32 %v719_v26, %v699_v25 }
 0x115   : > { %728 = vst [vmem:[%s1645_s11 + $0x30] sm:$0xff] %v680_v24 }
 0x116   : > { %729 = vst [vmem:[%s1645_s11 + $0x38] sm:$0xff] %v720_v27 }
 0x117 PF: > { %s12_s9 = sadd.s32 1, %s812_s9  }
 0x118   : > { %p9_p4 = scmp.ge.s32.totalorder %s12_s9, 4  }
 0x11a   :  { %11 = sbr.rel (!%p9_p4) target bundleno = 1 (0x1), region = 58 }

</bundles_post_ra>
